<compile_context>
chip_gen: v7x
topology: tpu7x:2x2x1
jax: 0.10.0
libtpu: 0.0.40
codegen_flags: <defaults>
</compile_context>

<pallas_src>
import math

import jax
import jax.numpy as jnp
from jax.experimental import pallas as pl
from jax.experimental.pallas import tpu as pltpu


# ---------------------------------------------------------------------------
# One-time parameter preparation (NOT in the per-step hot path).
# ---------------------------------------------------------------------------
def prepare_lstm_params(weight_ih, weight_hh, bias, *, param_dtype=jnp.float32):
    """Reorder gates [i,j,f,o] -> [i,o | j,f], transpose to (K, 4H), cast W.

    The [i,o | j,f] column order lets the kernel apply tanh to one contiguous
    half of the (B, 4H) pre-activation slab and sigmoid to the other half.
    Bias stays f32 (tiny; added to the f32 accumulator).
    """
    H = weight_hh.shape[1]

    def rows(w):
        i, j, f, o = w[:H], w[H:2 * H], w[2 * H:3 * H], w[3 * H:]
        return jnp.concatenate([i, o, j, f], axis=0)

    def cols(b):
        i, j, f, o = b[:, :H], b[:, H:2 * H], b[:, 2 * H:3 * H], b[:, 3 * H:]
        return jnp.concatenate([i, o, j, f], axis=1)

    w_x = rows(weight_ih).T.astype(param_dtype)   # (I, 4H)
    w_h = rows(weight_hh).T.astype(param_dtype)   # (H, 4H)
    b = cols(bias).astype(jnp.float32)            # (B, 4H), f32
    return w_x, w_h, b


def _gates(z, c, H):
    """f32 gate math on a [i, o | j, f] pre-activation slab (shared by kernels)."""
    tg = jnp.tanh(z[:, :2 * H])          # [ i | o ]  one half-slab EUP call
    sg = jax.nn.sigmoid(z[:, 2 * H:])    # [ j | f ]  one half-slab EUP call
    it, ot = tg[:, :H], tg[:, H:]
    jt, ft = sg[:, :H], sg[:, H:]
    ct = c * ft + it * jt
    ht = jnp.tanh(ct) * ot
    return ct, ht


# ---------------------------------------------------------------------------
# Single-step kernel (matches module.forward one call).
# ---------------------------------------------------------------------------
def _lstm_cell_kernel(x_ref, hx_ref, cx_ref, wx_ref, wh_ref, b_ref,
                      ct_ref, ht_ref):
    H = cx_ref.shape[-1]
    # Two MXU dots into one f32 accumulator — no lane-axis concat of [x|hx].
    z = (jnp.dot(x_ref[...].astype(wx_ref.dtype), wx_ref[...],
                 preferred_element_type=jnp.float32)
         + jnp.dot(hx_ref[...].astype(wh_ref.dtype), wh_ref[...],
                   preferred_element_type=jnp.float32)
         + b_ref[...])
    ct, ht = _gates(z, cx_ref[...].astype(jnp.float32), H)
    ct_ref[...] = ct.astype(ct_ref.dtype)   # two direct stores, no concat
    ht_ref[...] = ht.astype(ht_ref.dtype)


def lstm_cell(x, hx, cx, w_x, w_h, bias, *, alias_cx_to_ct=False):
    """One LSTMCell step.  x:(B,I); hx,cx:(B,H); w_x:(I,4H); w_h:(H,4H);
    bias:(B,4H) from prepare_lstm_params().  Returns (ct, ht)."""
    B, I = x.shape
    H = cx.shape[-1]
    assert hx.shape == (B, H) and w_x.shape == (I, 4 * H)
    assert w_h.shape == (H, 4 * H) and bias.shape == (B, 4 * H)

    full = lambda shape: pl.BlockSpec(shape, lambda: (0,) * len(shape),
                                      memory_space=pltpu.VMEM)
    extra = {}
    if alias_cx_to_ct:
        # Per-step path only: reuse cx's buffer for the ct output (donation).
        extra["input_output_aliases"] = {2: 0}

    return pl.pallas_call(
        _lstm_cell_kernel,
        out_shape=(jax.ShapeDtypeStruct((B, H), cx.dtype),
                   jax.ShapeDtypeStruct((B, H), hx.dtype)),
        in_specs=[full((B, I)), full((B, H)), full((B, H)),
                  full((I, 4 * H)), full((H, 4 * H)), full((B, 4 * H))],
        out_specs=(full((B, H)), full((B, H))),
        **extra,
    )(x, hx, cx, w_x, w_h, bias)


# ---------------------------------------------------------------------------
# Sequence-resident kernel: the time loop lives INSIDE one pallas_call.
# ---------------------------------------------------------------------------
def _lstm_seq_kernel(zx_ref, wh_ref, h0_ref, c0_ref, hs_ref, cfin_ref,
                     h_scr, c_scr):
    H = c0_ref.shape[-1]

    @pl.when(pl.program_id(0) == 0)
    def _():
        h_scr[...] = h0_ref[...].astype(jnp.float32)
        c_scr[...] = c0_ref[...].astype(jnp.float32)

    h = h_scr[...]
    c = c_scr[...]
    for u in range(zx_ref.shape[0]):   # static unroll of `unroll` timesteps
        # zx already holds x@W_x + bias; only the serial h@W_h stays in the loop.
        z = zx_ref[u] + jnp.dot(h.astype(wh_ref.dtype), wh_ref[...],
                                preferred_element_type=jnp.float32)
        c, h = _gates(z, c, H)
        hs_ref[u] = h.astype(hs_ref.dtype)
    h_scr[...] = h
    c_scr[...] = c
    cfin_ref[...] = c.astype(cfin_ref.dtype)   # VMEM-resident; HBM write at end


def lstm_sequence(xs, h0, c0, w_x, w_h, bias, *, unroll=4):
    """Run the cell over xs:(T,B,I) in ONE pallas_call.

    Input projection for ALL timesteps is hoisted out of the recurrence as a
    single (T*B, I)@(I, 4H) matmul; grid=(T/unroll,) "arbitrary" with W_h
    VMEM-resident and h/c carried in VMEM scratch.  Returns (hs:(T,B,H), c_T).
    """
    T, B, I = xs.shape
    H = c0.shape[-1]
    assert T % unroll == 0

    zx = jnp.dot(xs.reshape(T * B, I).astype(w_x.dtype), w_x,
                 preferred_element_type=jnp.float32).reshape(T, B, 4 * H)
    zx = zx + bias.astype(jnp.float32)[None]

    hs, c_fin = pl.pallas_call(
        _lstm_seq_kernel,
        out_shape=(jax.ShapeDtypeStruct((T, B, H), xs.dtype),
                   jax.ShapeDtypeStruct((B, H), c0.dtype)),
        grid=(T // unroll,),
        in_specs=[
            pl.BlockSpec((unroll, B, 4 * H), lambda t: (t, 0, 0),
                         memory_space=pltpu.VMEM),
            pl.BlockSpec((H, 4 * H), lambda t: (0, 0), memory_space=pltpu.VMEM),
            pl.BlockSpec((B, H), lambda t: (0, 0), memory_space=pltpu.VMEM),
            pl.BlockSpec((B, H), lambda t: (0, 0), memory_space=pltpu.VMEM),
        ],
        out_specs=(
            pl.BlockSpec((unroll, B, H), lambda t: (t, 0, 0),
                         memory_space=pltpu.VMEM),
            pl.BlockSpec((B, H), lambda t: (0, 0), memory_space=pltpu.VMEM),
        ),
        scratch_shapes=[pltpu.VMEM((B, H), jnp.float32),
                        pltpu.VMEM((B, H), jnp.float32)],
        compiler_params=pltpu.CompilerParams(
            dimension_semantics=("arbitrary",)),
    )(zx, w_h, h0, c0)
    return hs, c_fin


# ---------------------------------------------------------------------------
# Pure-JAX reference (mirrors the PyTorch module exactly).
# ---------------------------------------------------------------------------
def _reference(x, hx, cx, weight_ih, weight_hh, bias):
    H = weight_hh.shape[1]
    wxi, wxj = weight_ih[:H], weight_ih[H:2 * H]
    wxf, wxo = weight_ih[2 * H:3 * H], weight_ih[3 * H:]
    whi, whj = weight_hh[:H], weight_hh[H:2 * H]
    whf, who = weight_hh[2 * H:3 * H], weight_hh[3 * H:]
    bi, bj = bias[:, :H], bias[:, H:2 * H]
    bf, bo = bias[:, 2 * H:3 * H], bias[:, 3 * H:]
    it = jnp.tanh(x @ wxi.T + hx @ whi.T + bi)
    jt = jax.nn.sigmoid(x @ wxj.T + hx @ whj.T + bj)
    ft = jax.nn.sigmoid(x @ wxf.T + hx @ whf.T + bf)
    ot = jnp.tanh(x @ wxo.T + hx @ who.T + bo)
    ct = cx * ft + it * jt
    ht = jnp.tanh(ct) * ot
    return ct, ht


if __name__ == "__main__":
    batch_size, input_size, hidden_size, seq_len = 8, 64, 32, 8

    key = jax.random.PRNGKey(0)
    k_wih, k_whh, k_b, k_x, k_h, k_c, k_xs = jax.random.split(key, 7)

    std = 1.0 / math.sqrt(hidden_size)
    weight_ih = jax.random.uniform(k_wih, (4 * hidden_size, input_size),
                                   jnp.float32, -std, std)
    weight_hh = jax.random.uniform(k_whh, (4 * hidden_size, hidden_size),
                                   jnp.float32, -std, std)
    bias = jax.random.uniform(k_b, (batch_size, 4 * hidden_size),
                              jnp.float32, -std, std)

    x = jax.random.normal(k_x, (batch_size, input_size), jnp.float32)
    hx = jax.random.normal(k_h, (batch_size, hidden_size), jnp.float32)
    cx = jax.random.normal(k_c, (batch_size, hidden_size), jnp.float32)

    # --- f32 single-step check (matches the module forward exactly) ---------
    wx32, wh32, b32 = prepare_lstm_params(weight_ih, weight_hh, bias,
                                          param_dtype=jnp.float32)
    ct, ht = lstm_cell(x, hx, cx, wx32, wh32, b32)
    jax.block_until_ready((ct, ht))

    ct_ref, ht_ref = _reference(x, hx, cx, weight_ih, weight_hh, bias)
    assert jnp.allclose(ct, ct_ref, atol=1e-5, rtol=1e-5)
    assert jnp.allclose(ht, ht_ref, atol=1e-5, rtol=1e-5)

    # --- bf16 MXU-operand path (gate math stays f32 in-kernel) -------------
    wx16, wh16, b16 = prepare_lstm_params(weight_ih, weight_hh, bias,
                                          param_dtype=jnp.bfloat16)
    ct16, ht16 = lstm_cell(x, hx, cx, wx16, wh16, b16)
    jax.block_until_ready((ct16, ht16))
    assert float(jnp.max(jnp.abs(ct16 - ct_ref))) < 0.2
    assert float(jnp.max(jnp.abs(ht16 - ht_ref))) < 0.2

    # --- sequence-resident kernel (time loop inside one pallas_call) -------
    xs = jax.random.normal(k_xs, (seq_len, batch_size, input_size), jnp.float32)
    hs, c_fin = lstm_sequence(xs, hx, cx, wx32, wh32, b32, unroll=4)
    jax.block_until_ready((hs, c_fin))

    h_r, c_r = hx, cx
    hs_ref = []
    for t in range(seq_len):
        c_r, h_r = _reference(xs[t], h_r, c_r, weight_ih, weight_hh, bias)
        hs_ref.append(h_r)
    hs_ref = jnp.stack(hs_ref)
    assert jnp.allclose(hs, hs_ref, atol=1e-4, rtol=1e-4)
    assert jnp.allclose(c_fin, c_r, atol=1e-4, rtol=1e-4)

    print("KERNEL_OK")
</pallas_src>

<mosaic_0001>
module attributes {stable_mosaic.version = 11 : i64} {
  func.func @_lstm_cell_kernel(%arg0: memref<8x64xf32, #tpu.memory_space<vmem>>, %arg1: memref<8x32xf32, #tpu.memory_space<vmem>>, %arg2: memref<8x32xf32, #tpu.memory_space<vmem>>, %arg3: memref<64x128xf32, #tpu.memory_space<vmem>>, %arg4: memref<32x128xf32, #tpu.memory_space<vmem>>, %arg5: memref<8x128xf32, #tpu.memory_space<vmem>>, %arg6: memref<8x32xf32, #tpu.memory_space<vmem>>, %arg7: memref<8x32xf32, #tpu.memory_space<vmem>>) attributes {dimension_semantics = [], scalar_prefetch = 0 : i64, scratch_operands = 0 : i64, tpu.core_type = #tpu.core_type<tc>} {
    %c0 = arith.constant 0 : index
    %c0_0 = arith.constant 0 : index
    %0 = vector.load %arg0[%c0, %c0_0] : memref<8x64xf32, #tpu.memory_space<vmem>>, vector<8x64xf32>
    %c0_1 = arith.constant 0 : index
    %c0_2 = arith.constant 0 : index
    %1 = vector.load %arg3[%c0_1, %c0_2] : memref<64x128xf32, #tpu.memory_space<vmem>>, vector<64x128xf32>
    %cst = arith.constant dense<0.000000e+00> : vector<8x128xf32>
    %2 = tpu.matmul %0, %1, %cst {dimension_numbers = #tpu.dot_dimension_numbers<[1], [0], [0], [1], [0, 0, 1, 1], [], []>} : vector<8x64xf32>, vector<64x128xf32>, vector<8x128xf32> -> vector<8x128xf32>
    %c0_3 = arith.constant 0 : index
    %c0_4 = arith.constant 0 : index
    %3 = vector.load %arg1[%c0_3, %c0_4] : memref<8x32xf32, #tpu.memory_space<vmem>>, vector<8x32xf32>
    %c0_5 = arith.constant 0 : index
    %c0_6 = arith.constant 0 : index
    %4 = vector.load %arg4[%c0_5, %c0_6] : memref<32x128xf32, #tpu.memory_space<vmem>>, vector<32x128xf32>
    %cst_7 = arith.constant dense<0.000000e+00> : vector<8x128xf32>
    %5 = tpu.matmul %3, %4, %cst_7 {dimension_numbers = #tpu.dot_dimension_numbers<[1], [0], [0], [1], [0, 0, 1, 1], [], []>} : vector<8x32xf32>, vector<32x128xf32>, vector<8x128xf32> -> vector<8x128xf32>
    %6 = arith.addf %2, %5 : vector<8x128xf32>
    %c0_8 = arith.constant 0 : index
    %c0_9 = arith.constant 0 : index
    %7 = vector.load %arg5[%c0_8, %c0_9] : memref<8x128xf32, #tpu.memory_space<vmem>>, vector<8x128xf32>
    %8 = arith.addf %6, %7 : vector<8x128xf32>
    %c0_10 = arith.constant 0 : index
    %c0_11 = arith.constant 0 : index
    %9 = vector.load %arg2[%c0_10, %c0_11] : memref<8x32xf32, #tpu.memory_space<vmem>>, vector<8x32xf32>
    %10 = vector.extract_strided_slice %8 {offsets = [0, 0], sizes = [8, 64], strides = [1, 1]} : vector<8x128xf32> to vector<8x64xf32>
    %11 = math.tanh %10 : vector<8x64xf32>
    %12 = vector.extract_strided_slice %8 {offsets = [0, 64], sizes = [8, 64], strides = [1, 1]} : vector<8x128xf32> to vector<8x64xf32>
    %13 = arith.negf %12 : vector<8x64xf32>
    %14 = math.exp %13 : vector<8x64xf32>
    %cst_12 = arith.constant 1.000000e+00 : f32
    %15 = vector.broadcast %cst_12 : f32 to vector<8x64xf32>
    %16 = arith.addf %15, %14 : vector<8x64xf32>
    %17 = arith.divf %15, %16 : vector<8x64xf32>
    %18 = vector.extract_strided_slice %11 {offsets = [0, 0], sizes = [8, 32], strides = [1, 1]} : vector<8x64xf32> to vector<8x32xf32>
    %19 = vector.extract_strided_slice %11 {offsets = [0, 32], sizes = [8, 32], strides = [1, 1]} : vector<8x64xf32> to vector<8x32xf32>
    %20 = vector.extract_strided_slice %17 {offsets = [0, 0], sizes = [8, 32], strides = [1, 1]} : vector<8x64xf32> to vector<8x32xf32>
    %21 = vector.extract_strided_slice %17 {offsets = [0, 32], sizes = [8, 32], strides = [1, 1]} : vector<8x64xf32> to vector<8x32xf32>
    %22 = arith.mulf %9, %21 : vector<8x32xf32>
    %23 = arith.mulf %18, %20 : vector<8x32xf32>
    %24 = arith.addf %22, %23 : vector<8x32xf32>
    %25 = math.tanh %24 : vector<8x32xf32>
    %26 = arith.mulf %25, %19 : vector<8x32xf32>
    %c0_13 = arith.constant 0 : index
    %c0_14 = arith.constant 0 : index
    %27 = vector.load %arg6[%c0_13, %c0_14] : memref<8x32xf32, #tpu.memory_space<vmem>>, vector<8x32xf32>
    tpu.vector_store %arg6[%c0_13, %c0_14], %24 {strides = array<i32>} : memref<8x32xf32, #tpu.memory_space<vmem>>, vector<8x32xf32>,
    %c0_15 = arith.constant 0 : index
    %c0_16 = arith.constant 0 : index
    %28 = vector.load %arg7[%c0_15, %c0_16] : memref<8x32xf32, #tpu.memory_space<vmem>>, vector<8x32xf32>
    tpu.vector_store %arg7[%c0_15, %c0_16], %26 {strides = array<i32>} : memref<8x32xf32, #tpu.memory_space<vmem>>, vector<8x32xf32>,
    return
  }
}

</mosaic_0001>

<bundles_post_ra>
// kernel: tpu_custom_call.1
= control target key start
LH: loop header
LB: loop body
LE: loop exit
PB: predicated region body
PF: predicated region fallthrough
CT: control target
= control target key end

     0   :  { %13 = vsyncpa [#allocation3], 0  ;;  %s720_s0 = inlined_call_operand.hbm [shape: f32[8,64], index: 0, kind: input, shape index: {}]   ;;  %s721_s1 = inlined_call_operand.hbm [shape: f32[8,32], index: 1, kind: input, shape index: {}]   ;;  %s722_s2 = inlined_call_operand.hbm [shape: f32[8,32], index: 2, kind: input, shape index: {}]   ;;  %s723_s3 = inlined_call_operand.hbm [shape: f32[64,128], index: 3, kind: input, shape index: {}]   ;;  %s724_s4 = inlined_call_operand.hbm [shape: f32[32,128], index: 4, kind: input, shape index: {}]   ;;  %s725_s5 = inlined_call_operand.vmem [shape: f32[8,128], index: 5, kind: input, shape index: {}]   ;;  %s726_s6 = inlined_call_operand.hbm [shape: f32[8,32], index: 6, kind: output, shape index: {0}]   ;;  %s727_s7 = inlined_call_operand.hbm [shape: f32[8,32], index: 7, kind: output, shape index: {1}]  }
   0x1   :  { %14 = vsyncpa [#allocation6], 0 }
   0x2   :  { %15 = vsyncpa [#allocation9], 0 }
   0x3   :  { %16 = vsyncpa [#allocation4], 0 }
   0x4   :  { %17 = vsyncpa [#allocation13], 0  ;;  %s562_s24 = smov [#allocation5]   ;;  %s563_s26 = smov [#allocation8]  }
   0x5   :  { %s34_s25 = sshll.u32 %s562_s24, 4  ;;  %s53_s27 = sshll.u32 %s563_s26, 4  ;;  %s35_s25 = int_to_ptr.vmem [resolvable:$true] %s34_s25  ;;  %s617_s27 = int_to_ptr.vmem [resolvable:$true] %s53_s27 }
   0x6   :  { %s398_s30 = scalar_lea.hbm %s721_s1, 128 }
   0x7   :  { %p399_p0 = scmp.ne.s32.totalorder %s721_s1, %s398_s30  ;;  %p402_p1 = scmp.lt.u32.totalorder %s398_s30, %s721_s1 }
   0x9   :  { %p404_p2 = pnand %p402_p1, %p399_p0 }
   0xb   :  { %407 = shalt.err (!%p404_p2)
}
   0xc   :  { %s408_s12 = scalar_lea.vmem %s35_s25, 128  ;;  %p413_p4 = scmp.lt.s32.totalorder %s35_s25, %s35_s25 }
   0xd   :  { %p409_p3 = scmp.ne.s32.totalorder %s35_s25, %s408_s12  ;;  %p414_p5 = scmp.lt.s32.totalorder %s408_s12, %s408_s12 }
   0xf   :  { %p415_p6 = por %p414_p5, %p413_p4 }
  0x11   :  { %p416_p7 = pnand %p415_p6, %p409_p3 }
  0x13   :  { %419 = shalt.err (!%p416_p7)
}
  0x14   :  { %37 = dma.hbm_to_vmem [thread:$0]  %s721_s1, 128, %s35_s25, [#allocation6]  }
  0x15   :  { %s420_s17 = scalar_lea.hbm %s723_s3, 1024 }
  0x16   :  { %p421_p8 = scmp.ne.s32.totalorder %s723_s3, %s420_s17  ;;  %p424_p9 = scmp.lt.u32.totalorder %s420_s17, %s723_s3 }
  0x18   :  { %p426_p10 = pnand %p424_p9, %p421_p8 }
  0x1a   :  { %429 = shalt.err (!%p426_p10)
}
  0x1b   :  { %s430_s22 = scalar_lea.vmem %s617_s27, 1024  ;;  %p435_p12 = scmp.lt.s32.totalorder %s617_s27, %s617_s27 }
  0x1c   :  { %p431_p11 = scmp.ne.s32.totalorder %s617_s27, %s430_s22  ;;  %p436_p13 = scmp.lt.s32.totalorder %s430_s22, %s430_s22 }
  0x1e   :  { %p437_p0 = por %p436_p13, %p435_p12 }
  0x20   :  { %p438_p1 = pnand %p437_p0, %p431_p11 }
  0x22   :  { %441 = shalt.err (!%p438_p1)
}
  0x23   :  { %s564_s1 = smov 128   ;;  %s565_s23 = smov 8  }
  0x24   :  { %59 = dma.hbm_to_vmem [thread:$0]  %s723_s3, 1024, %s617_s27, [#allocation9], %s564_s1, %s564_s1, %s565_s23  }
  0x25   :  { %s566_s26 = smov [#allocation2]   ;;  %s567_s29 = smov [#allocation7]  }
  0x26   :  { %s24_s28 = sshll.u32 %s566_s26, 4  ;;  %s44_s30 = sshll.u32 %s567_s29, 4  ;;  %s25_s28 = int_to_ptr.vmem [resolvable:$true] %s24_s28  ;;  %s45_s30 = int_to_ptr.vmem [resolvable:$true] %s44_s30 }
  0x27   :  { %s442_s10 = scalar_lea.hbm %s720_s0, 128 }
  0x28   :  { %p443_p2 = scmp.ne.s32.totalorder %s720_s0, %s442_s10  ;;  %p446_p3 = scmp.lt.u32.totalorder %s442_s10, %s720_s0 }
  0x2a   :  { %p448_p4 = pnand %p446_p3, %p443_p2 }
  0x2c   :  { %451 = shalt.err (!%p448_p4)
}
  0x2d   :  { %s452_s3 = scalar_lea.vmem %s25_s28, 128  ;;  %p457_p6 = scmp.lt.s32.totalorder %s25_s28, %s25_s28 }
  0x2e   :  { %p453_p5 = scmp.ne.s32.totalorder %s25_s28, %s452_s3  ;;  %p458_p7 = scmp.lt.s32.totalorder %s452_s3, %s452_s3 }
  0x30   :  { %p459_p8 = por %p458_p7, %p457_p6 }
  0x32   :  { %p460_p9 = pnand %p459_p8, %p453_p5 }
  0x34   :  { %463 = shalt.err (!%p460_p9)
}
  0x35   :  { %27 = dma.hbm_to_vmem [thread:$0]  %s720_s0, 128, %s25_s28, [#allocation3]  }
  0x36   :  { %s464_s18 = scalar_lea.hbm %s722_s2, 128 }
  0x37   :  { %p465_p10 = scmp.ne.s32.totalorder %s722_s2, %s464_s18  ;;  %p468_p11 = scmp.lt.u32.totalorder %s464_s18, %s722_s2 }
  0x39   :  { %p470_p12 = pnand %p468_p11, %p465_p10 }
  0x3b   :  { %473 = shalt.err (!%p470_p12)
}
  0x3c   :  { %s474_s24 = scalar_lea.vmem %s45_s30, 128  ;;  %p479_p0 = scmp.lt.s32.totalorder %s45_s30, %s45_s30 }
  0x3d   :  { %p475_p13 = scmp.ne.s32.totalorder %s45_s30, %s474_s24  ;;  %p480_p1 = scmp.lt.s32.totalorder %s474_s24, %s474_s24 }
  0x3f   :  { %p481_p2 = por %p480_p1, %p479_p0 }
  0x41   :  { %p482_p3 = pnand %p481_p2, %p475_p13 }
  0x43   :  { %485 = shalt.err (!%p482_p3)
}
  0x44   :  { %47 = dma.hbm_to_vmem [thread:$0]  %s722_s2, 128, %s45_s30, [#allocation6]  }
  0x45   :  { %s568_s26 = smov [#allocation10]   ;;  %s486_s9 = scalar_lea.hbm %s724_s4, 512 }
  0x46   :  { %s65_s28 = sshll.u32 %s568_s26, 4  ;;  %p487_p4 = scmp.ne.s32.totalorder %s724_s4, %s486_s9  ;;  %s66_s28 = int_to_ptr.vmem [resolvable:$true] %s65_s28 }
  0x47   :  { %p490_p5 = scmp.lt.u32.totalorder %s486_s9, %s724_s4 }
  0x49   :  { %p492_p6 = pnand %p490_p5, %p487_p4 }
  0x4b   :  { %495 = shalt.err (!%p492_p6)
}
  0x4c   :  { %s496_s14 = scalar_lea.vmem %s66_s28, 512  ;;  %p501_p8 = scmp.lt.s32.totalorder %s66_s28, %s66_s28 }
  0x4d   :  { %p497_p7 = scmp.ne.s32.totalorder %s66_s28, %s496_s14  ;;  %p502_p9 = scmp.lt.s32.totalorder %s496_s14, %s496_s14 }
  0x4f   :  { %p503_p10 = por %p502_p9, %p501_p8 }
  0x51   :  { %p504_p11 = pnand %p503_p10, %p497_p7 }
  0x53   :  { %507 = shalt.err (!%p504_p11)
}
  0x54   :  { %71 = dma.hbm_to_vmem [thread:$0]  %s724_s4, 512, %s66_s28, [#allocation9], %s564_s1, %s564_s1, %s565_s23  }
  0x55   :  { %552 = dma.done.wait [#allocation3], 128  }
  0x56   :  { %553 = vsyncadd [#allocation3], 4294967168 }
  0x57   :  { %554 = dma.done.wait [#allocation6], 256  }
  0x58   :  { %555 = vsyncadd [#allocation6], 4294967040 }
  0x59   :  { %556 = dma.done.wait [#allocation9], 1536  }
  0x5a   :  { %557 = vsyncadd [#allocation9], 4294965760  ;;  %v569_v0 = vmov 0.0|0.0   ;;  %vm570_vm0 = vmmov 0   ;;  %v571_v1 = vmov 0.0   ;;  %v90_v2 = vld [vmem:[#allocation8] sm:$0xff] }
  0x5b   :  { %363 = vmatprep.subr.bf16.mxu1 %v569_v0  ;;  %357 = vmatprep.subr.bf16.mxu0 %v569_v0  ;;  %v91_v3 = vld [vmem:[#allocation8 + $0x8] sm:$0xff]  ;;  %v92_v4 = vld [vmem:[#allocation8 + $0x10] sm:$0xff]  ;;  %v93_v6 = vld [vmem:[#allocation8 + $0x18] sm:$0xff]  ;;  %vm103_vm1 = vcmask 261120   ;;  %vm177_vm2 = vcmask 523264   ;;  %s572_s23 = smov 96  }
  0x5c   :  { %335 = vmatprep.mubr.msk.f32.mxu0 %vm570_vm0, %v571_v1  ;;  %354 = vmatprep.mubr.msk.f32.mxu1 %vm570_vm0, %v571_v1  ;;  %v364_v5 = vpack.c.bf16 %v91_v3, %v90_v2  ;;  %v99_v7 = vld [vmem:[#allocation10] sm:$0xff]  ;;  %v100_v8 = vld [vmem:[#allocation10 + $0x8] sm:$0xff]  ;;  %v101_v10 = vld [vmem:[#allocation10 + $0x10] sm:$0xff]  ;;  %v367_v11 = vpack.c.bf16 %v93_v6, %v92_v4  ;;  %s573_s3 = smov 32   ;;  %s574_s27 = smov 64  }
  0x5d   :  { %v358_v9 = vpack.c.bf16 %v100_v8, %v99_v7  ;;  %v102_v12 = vld [vmem:[#allocation10 + $0x18] sm:$0xff]  ;;  %v94_v13 = vld [vmem:[#allocation8 + $0x20] sm:$0xff]  ;;  %v95_v14 = vld [vmem:[#allocation8 + $0x28] sm:$0xff] }
  0x5e   :  { %365 = vmatpush3.bf16.msra.mxu1 %v364_v5  ;;  %v361_v15 = vpack.c.bf16 %v102_v12, %v101_v10  ;;  %v370_v16 = vpack.c.bf16 %v95_v14, %v94_v13  ;;  %v96_v17 = vld [vmem:[#allocation8 + $0x30] sm:$0xff]  ;;  %v97_v18 = vld [vmem:[#allocation8 + $0x38] sm:$0xff]  ;;  %v89_v21 = vld [vmem:[#allocation2] sm:$0xff] }
  0x5f   :  { %366 = vmatprep.subr.bf16.mxu1 %v569_v0  ;;  %359 = vmatpush3.bf16.msra.mxu0 %v358_v9  ;;  %v98_v19 = vld [vmem:[#allocation5] sm:$0xff]  ;;  %v373_v20 = vpack.c.bf16 %v97_v18, %v96_v17  ;;  %v251_v25 = vld [vmem:[%s725_s5] sm:$0xff]  ;;  %v253_v35 = vld [vmem:[#allocation7] sm:$0xff]  ;;  %s575_s5 = smov [#allocation11]  }
  0x60   :  { %360 = vmatprep.subr.bf16.mxu0 %v569_v0  ;;  %s285_s15 = sshll.u32 %s575_s5, 4  ;;  %s286_s15 = int_to_ptr.vmem [resolvable:$true] %s285_s15 }
  0x61   :  { %s508_s16 = scalar_lea.vmem %s286_s15, 128  ;;  %p513_p13 = scmp.lt.s32.totalorder %s286_s15, %s286_s15 }
  0x62   :  { %368 = vmatpush3.bf16.msra.mxu1 %v367_v11  ;;  %p509_p12 = scmp.ne.s32.totalorder %s286_s15, %s508_s16  ;;  %p514_p0 = scmp.lt.s32.totalorder %s508_s16, %s508_s16 }
  0x63   :  { %369 = vmatprep.subr.bf16.mxu1 %v569_v0  ;;  %362 = vmatpush3.bf16.msra.mxu0 %v361_v15 }
  0x64   :  { %p515_p1 = por %p514_p0, %p513_p13 }
  0x66   :  { %371 = vmatpush3.bf16.msra.mxu1 %v370_v16  ;;  %336 = vmatmul.mubr.msk.f32.vlgmr.msra.gmra.mrb[0].mxu0 %vm103_vm1, %v98_v19  ;;  %p516_p2 = pnand %p515_p1, %p509_p12 }
  0x67   :  { %372 = vmatprep.subr.bf16.mxu1 %v569_v0 }
  0x6a   :  { %374 = vmatpush3.bf16.msra.mxu1 %v373_v20 }
  0x6d   :  { %355 = vmatmul.mubr.msk.f32.vlgmr.msra.gmra.mrb[0].mxu1 %vm177_vm2, %v89_v21 }
 0x139   :  { %v173_v22 = vpop.f32.mrb[0].mxu0 }
 0x13a   :  { %v337_v23 = vpop.f32.mrb[1].mxu0 }
 0x140   :  { %v247_v24 = vpop.f32.mrb[0].mxu1 }
 0x141   :  { %v248_v26 = vadd.f32 %v247_v24, %v173_v22  ;;  %v356_v27 = vpop.f32.mrb[1].mxu1 }
 0x143   :  { %v252_v28 = vadd.f32 %v251_v25, %v248_v26 }
 0x145   :  { %390 = vtanh.f32 %v252_v28  ;;  %v312_v29 = vmul.f32 -1.442695, %v252_v28 }
 0x147   :  { %392 = vpow2.f32 %v312_v29 }
 0x14f   :  { %v391_v30 = vpop.eup %390 }
 0x150   :  { %273 = vrot.lane.b32.xlu1 %v391_v30, %s572_s23 }
 0x151   :  { %v393_v31 = vpop.eup %392 }
 0x152   :  { %v258_v32 = vadd.f32 1.0, %v393_v31 }
 0x154   :  { %394 = vrcp.f32 %v258_v32 }
 0x15e   :  { %v395_v33 = vpop.eup %394 }
 0x15f   :  { %262 = vrot.lane.b32.xlu0 %v395_v33, %s573_s3 }
 0x163   :  { %266 = vrot.lane.b32.xlu0 %v395_v33, %s574_s27 }
 0x1d1   :  { %v263_v34 = vpop.permute.xlu0 %262 }
 0x1d2   :  { %v265_v37 = vmul.f32 %v263_v34, %v253_v35 }
 0x1d5   :  { %v267_v36 = vpop.permute.xlu0 %266 }
 0x1d6   :  { %v269_v38 = vmul.f32 %v391_v30, %v267_v36 }
 0x1d8   :  { %v270_v39 = vadd.f32 %v269_v38, %v265_v37 }
 0x1da   :  { %396 = vtanh.f32 %v270_v39  ;;  %277 = vst.msk [vmem:[#allocation11] sm:$0xff] %vm103_vm1, %v270_v39 }
 0x1db   :  { %519 = shalt.err (!%p516_p2)
}
 0x1dc   :  { %s520_s19 = scalar_lea.hbm %s726_s6, 128 }
 0x1dd   :  { %p521_p3 = scmp.ne.s32.totalorder %s726_s6, %s520_s19  ;;  %p524_p4 = scmp.lt.u32.totalorder %s520_s19, %s726_s6 }
 0x1df   :  { %p526_p5 = pnand %p524_p4, %p521_p3 }
 0x1e1   :  { %529 = shalt.err (!%p526_p5)
}
 0x1e2   :  { %288 = dma.vmem_to_hbm [thread:$0]  %s286_s15, 128, %s726_s6, [#allocation4]   ;;  %v274_v41 = vpop.permute.xlu1 %273 }
 0x1e3   :  { %s576_s26 = smov [#allocation12]  }
 0x1e4   :  { %s295_s28 = sshll.u32 %s576_s26, 4  ;;  %v397_v40 = vpop.eup %396  ;;  %s296_s28 = int_to_ptr.vmem [resolvable:$true] %s295_s28 }
 0x1e5   :  { %v276_v42 = vmul.f32 %v397_v40, %v274_v41  ;;  %s530_s29 = scalar_lea.vmem %s296_s28, 128  ;;  %p535_p7 = scmp.lt.s32.totalorder %s296_s28, %s296_s28 }
 0x1e6   :  { %p531_p6 = scmp.ne.s32.totalorder %s296_s28, %s530_s29  ;;  %p536_p8 = scmp.lt.s32.totalorder %s530_s29, %s530_s29 }
 0x1e7   :  { %278 = vst.msk [vmem:[#allocation12] sm:$0xff] %vm103_vm1, %v276_v42 }
 0x1e8   :  { %p537_p9 = por %p536_p8, %p535_p7 }
 0x1ea   :  { %p538_p10 = pnand %p537_p9, %p531_p6 }
 0x1ec   :  { %541 = shalt.err (!%p538_p10)
}
 0x1ed   :  { %s542_s10 = scalar_lea.hbm %s727_s7, 128 }
 0x1ee   :  { %p543_p11 = scmp.ne.s32.totalorder %s727_s7, %s542_s10  ;;  %p546_p12 = scmp.lt.u32.totalorder %s542_s10, %s727_s7 }
 0x1f0   :  { %p548_p13 = pnand %p546_p12, %p543_p11 }
 0x1f2   :  { %551 = shalt.err (!%p548_p13)
}
 0x1f3   :  { %298 = dma.vmem_to_hbm [thread:$0]  %s296_s28, 128, %s727_s7, [#allocation13]  }
 0x1f4   :  { %558 = dma.done.wait [#allocation4], 128  }
 0x1f5   :  { %559 = vsyncadd [#allocation4], 4294967168 }
 0x1f6   :  { %560 = dma.done.wait [#allocation13], 128  }
 0x1f7   :  { %561 = vsyncadd [#allocation13], 4294967168 }
 0x1f8   :  { %305 = vsyncpa [#allocation3], 1 }
 0x1f9   :  { %306 = vsyncpa [#allocation6], 1 }
 0x1fa   :  { %307 = vsyncpa [#allocation9], 1 }
 0x1fb   :  { %308 = vsyncpa [#allocation4], 1 }
 0x1fc   :  { %309 = vsyncpa [#allocation13], 1 }

</bundles_post_ra>
